<compile_context>
chip_gen: v7x
topology: tpu7x:2x2x1
jax: 0.10.0
libtpu: 0.0.40
codegen_flags: <defaults>
</compile_context>

<pallas_src>
import jax
import jax.numpy as jnp
from jax.experimental import pallas as pl
from jax.experimental.pallas import tpu as pltpu

_INV_SQRT2 = 0.7071067811865476


# ---------------------------------------------------------------------------
# Kernels
# ---------------------------------------------------------------------------

def _layernorm_f32(x, g, b):
    mu = jnp.mean(x, axis=-1, keepdims=True)
    var = jnp.mean((x - mu) * (x - mu), axis=-1, keepdims=True)
    xn = (x - mu) * jax.lax.rsqrt(var + 1e-5)
    return xn * g + b


def _gelu_exact(h):
    # PyTorch nn.GELU() default: exact erf formulation.
    return 0.5 * h * (1.0 + jax.lax.erf(h * _INV_SQRT2))


def _ffn_kernel_fused(x_ref, g_ref, b_ref, w1_ref, b1_ref, w2_ref, b2_ref, o_ref):
    """Weights resident in VMEM. grid = (token_tiles,)."""
    x = x_ref[...].astype(jnp.float32)
    xn = _layernorm_f32(x, g_ref[...].astype(jnp.float32),
                        b_ref[...].astype(jnp.float32))
    h = jnp.dot(xn.astype(w1_ref.dtype), w1_ref[...],
                preferred_element_type=jnp.float32)
    h = _gelu_exact(h + b1_ref[...].astype(jnp.float32))
    out = jnp.dot(h.astype(w2_ref.dtype), w2_ref[...],
                  preferred_element_type=jnp.float32)
    o_ref[...] = (out + b2_ref[...].astype(jnp.float32)).astype(o_ref.dtype)


def _ffn_kernel_tiled(x_ref, g_ref, b_ref, w1_ref, b1_ref, w2_ref, b2_ref,
                      o_ref, xn_ref, acc_ref):
    """Weights streamed in hidden chunks. grid = (token_tiles, hidden_tiles)."""
    h_idx = pl.program_id(1)
    n_h = pl.num_programs(1)

    # LayerNorm computed once per token tile, cached in VMEM in the matmul dtype.
    @pl.when(h_idx == 0)
    def _():
        x = x_ref[...].astype(jnp.float32)
        xn = _layernorm_f32(x, g_ref[...].astype(jnp.float32),
                            b_ref[...].astype(jnp.float32))
        xn_ref[...] = xn.astype(xn_ref.dtype)
        acc_ref[...] = jnp.zeros_like(acc_ref)

    # (tm, D) @ (D, th) -> f32, bias, GELU, then (tm, th) @ (th, D) accumulated.
    h = jnp.dot(xn_ref[...], w1_ref[...], preferred_element_type=jnp.float32)
    h = _gelu_exact(h + b1_ref[...].astype(jnp.float32))
    acc_ref[...] += jnp.dot(h.astype(w2_ref.dtype), w2_ref[...],
                            preferred_element_type=jnp.float32)

    @pl.when(h_idx == n_h - 1)
    def _():
        o_ref[...] = (acc_ref[...]
                      + b2_ref[...].astype(jnp.float32)).astype(o_ref.dtype)


# ---------------------------------------------------------------------------
# Wrapper
# ---------------------------------------------------------------------------

def _round_up(n, m):
    return ((n + m - 1) // m) * m


def _device_kind():
    try:
        return jax.devices()[0].device_kind.lower()
    except Exception:
        return ""


def _vmem_capacity_bytes(kind):
    try:
        cap = getattr(pltpu.get_tpu_info(), "vmem_capacity_bytes", None)
        if cap:
            return int(cap)
    except Exception:
        pass
    return 64 * 1024 * 1024 if "v7" in kind else 128 * 1024 * 1024


def _pick_hidden_tile(H, target):
    """Largest multiple of 128 that divides H and is <= target (None if none)."""
    if H % 128 != 0:
        return None
    t = min(H, max(128, (target // 128) * 128))
    while t >= 128:
        if H % t == 0:
            return t
        t -= 128
    return None


def _weight_spec(block_shape, index_map, single_buffer):
    """Weight BlockSpec; single-buffered when the block index is constant."""
    if single_buffer and hasattr(pl, "Buffered"):
        try:
            return pl.BlockSpec(block_shape, index_map,
                                pipeline_mode=pl.Buffered(1))
        except TypeError:
            pass
    return pl.BlockSpec(block_shape, index_map)


def feedforward_pallas(x, gamma, beta, w1, b1, w2, b2, *, tm=None, th=None):
    """x: (batch, seq, dim). w1: (dim, hidden), w2: (hidden, dim)."""
    B, N, D = x.shape
    H = w1.shape[1]
    T = B * N

    kind = _device_kind()
    vmem_cap = _vmem_capacity_bytes(kind)
    # Scoped-VMEM request with headroom (never the full physical VMEM, esp. v7x).
    vmem_limit = min(int(vmem_cap * 0.75), 112 * 1024 * 1024)

    # Generation-aware tile targets.
    if tm is None:
        if "v5" in kind:
            tm = 384
        elif "v7" in kind:
            tm = 512
        else:  # v6e / unknown
            tm = 768
    user_th = th
    th_target = user_th if user_th is not None else (256 if "v7" in kind else 1024)
    force_tiled = user_th is not None and user_th < H

    x_it = jnp.dtype(x.dtype).itemsize
    w_it = jnp.dtype(w1.dtype).itemsize
    out_it = x_it
    mm_it = w_it                      # cached LN output stored in matmul dtype
    sub = 16 if x.dtype == jnp.bfloat16 else 8

    single_buffer = hasattr(pl, "Buffered")
    wbuf = 1 if single_buffer else 2

    def fused_bytes(tm_):
        return (2 * tm_ * D * x_it + 2 * tm_ * D * out_it
                + wbuf * (2 * D * H) * w_it + wbuf * (H + 3 * D) * w_it
                + tm_ * H * 4 + tm_ * D * 4)

    def tiled_bytes(tm_, th_):
        return (2 * tm_ * D * x_it + 2 * tm_ * D * out_it
                + 2 * (2 * D * th_) * w_it + 2 * (th_ + 3 * D) * w_it
                + tm_ * D * mm_it + tm_ * D * 4 + tm_ * th_ * 4)

    # ---- token tile ----
    tm_eff = _round_up(min(tm, _round_up(T, sub)), sub)
    tm_floor = min(tm_eff, 128)

    # v7x megacore: if the whole problem is a single token tile, split it in two
    # so both TensorCores get work under the "parallel" token axis.
    if "v7" in kind and T > 256 and -(-T // tm_eff) == 1:
        tm_eff = _round_up(-(-T // 2), sub)

    # ---- path selection (weight-resident vs hidden-streamed) ----
    weight_bytes = 2 * D * H * w_it
    use_fused = (not force_tiled) and (weight_bytes <= 0.5 * vmem_limit)

    th_eff, n_h = H, 1
    if not use_fused:
        th_eff = _pick_hidden_tile(H, th_target)
        if th_eff is None:
            # Ragged hidden dim: fall back to weight-resident path.
            use_fused = True
            th_eff, n_h = H, 1
        else:
            while th_eff > 128 and tiled_bytes(tm_eff, th_eff) > vmem_limit:
                nxt = _pick_hidden_tile(H, th_eff - 128)
                if nxt is None or nxt >= th_eff:
                    break
                th_eff = nxt
            while tm_eff > tm_floor and tiled_bytes(tm_eff, th_eff) > vmem_limit:
                tm_eff = max(tm_floor, tm_eff - 128)
            n_h = H // th_eff
    if use_fused:
        while tm_eff > tm_floor and fused_bytes(tm_eff) > vmem_limit:
            tm_eff = max(tm_floor, tm_eff - 128)

    T_pad = _round_up(T, tm_eff)
    n_tok = T_pad // tm_eff

    # ---- prepare operands ----
    x2 = x.reshape(T, D)
    if T_pad != T:
        x2 = jnp.pad(x2, ((0, T_pad - T), (0, 0)))
    g2 = gamma.reshape(1, D)
    be2 = beta.reshape(1, D)
    b1_2 = b1.reshape(1, H)
    b2_2 = b2.reshape(1, D)

    # ---- cost estimate (weights re-streamed per token tile when tiled) ----
    w_passes = 1 if use_fused else n_tok
    bytes_accessed = int(
        T_pad * D * x_it + T_pad * D * out_it
        + w_passes * (w1.size + w2.size) * w_it
        + (b1.size + b2.size) * w_it
        + (gamma.size + beta.size) * jnp.dtype(gamma.dtype).itemsize)
    cost = pl.CostEstimate(flops=int(4 * T_pad * D * H),
                           transcendentals=int(T_pad * H),
                           bytes_accessed=bytes_accessed)

    def _call(sb_weights):
        if use_fused:
            grid = (n_tok,)
            in_specs = [
                pl.BlockSpec((tm_eff, D), lambda i: (i, 0)),           # x tile
                pl.BlockSpec((1, D), lambda i: (0, 0)),                # ln gamma
                pl.BlockSpec((1, D), lambda i: (0, 0)),                # ln beta
                _weight_spec((D, H), lambda i: (0, 0), sb_weights),    # w1 (resident)
                pl.BlockSpec((1, H), lambda i: (0, 0)),                # b1
                _weight_spec((H, D), lambda i: (0, 0), sb_weights),    # w2 (resident)
                pl.BlockSpec((1, D), lambda i: (0, 0)),                # b2
            ]
            out_specs = pl.BlockSpec((tm_eff, D), lambda i: (i, 0))
            scratch_shapes = []
            kernel = _ffn_kernel_fused
            dim_sem = ("parallel",)
        else:
            grid = (n_tok, n_h)
            in_specs = [
                pl.BlockSpec((tm_eff, D), lambda i, h: (i, 0)),        # x tile
                pl.BlockSpec((1, D), lambda i, h: (0, 0)),             # ln gamma
                pl.BlockSpec((1, D), lambda i, h: (0, 0)),             # ln beta
                pl.BlockSpec((D, th_eff), lambda i, h: (0, h)),        # w1 chunk
                pl.BlockSpec((1, th_eff), lambda i, h: (0, h)),        # b1 chunk
                pl.BlockSpec((th_eff, D), lambda i, h: (h, 0)),        # w2 chunk
                pl.BlockSpec((1, D), lambda i, h: (0, 0)),             # b2
            ]
            out_specs = pl.BlockSpec((tm_eff, D), lambda i, h: (i, 0))
            scratch_shapes = [
                pltpu.VMEM((tm_eff, D), w1.dtype),     # cached LN output (matmul dtype)
                pltpu.VMEM((tm_eff, D), jnp.float32),  # output accumulator
            ]
            kernel = _ffn_kernel_tiled
            dim_sem = ("parallel", "arbitrary")

        return pl.pallas_call(
            kernel,
            out_shape=jax.ShapeDtypeStruct((T_pad, D), x.dtype),
            grid_spec=pltpu.PrefetchScalarGridSpec(
                num_scalar_prefetch=0,
                grid=grid,
                in_specs=in_specs,
                out_specs=out_specs,
                scratch_shapes=scratch_shapes,
            ),
            compiler_params=pltpu.CompilerParams(
                dimension_semantics=dim_sem,
                vmem_limit_bytes=vmem_limit,
            ),
            cost_estimate=cost,
        )(x2, g2, be2, w1, b1_2, w2, b2_2)

    try:
        out = _call(single_buffer)
    except Exception:
        if not single_buffer:
            raise
        out = _call(False)   # retry with default double-buffered weight specs

    if T_pad != T:
        out = out[:T]
    return out.reshape(B, N, D)


# ---------------------------------------------------------------------------
# Reference + test harness
# ---------------------------------------------------------------------------

def feedforward_ref(x, gamma, beta, w1, b1, w2, b2):
    xf = x.astype(jnp.float32)
    mu = jnp.mean(xf, axis=-1, keepdims=True)
    var = jnp.mean((xf - mu) ** 2, axis=-1, keepdims=True)
    xn = (xf - mu) / jnp.sqrt(var + 1e-5) * gamma.astype(jnp.float32) \
        + beta.astype(jnp.float32)
    h = xn @ w1.astype(jnp.float32) + b1.astype(jnp.float32)
    h = 0.5 * h * (1.0 + jax.lax.erf(h / jnp.sqrt(2.0)))
    return h @ w2.astype(jnp.float32) + b2.astype(jnp.float32)


def _make_params(key, dim, hidden, dtype):
    kw1, kb1, kw2, kb2 = jax.random.split(key, 4)
    gamma = jnp.ones((dim,), dtype)
    beta = jnp.zeros((dim,), dtype)
    lim1 = 1.0 / float(dim) ** 0.5
    w1 = jax.random.uniform(kw1, (dim, hidden), jnp.float32, -lim1, lim1).astype(dtype)
    b1 = jax.random.uniform(kb1, (hidden,), jnp.float32, -lim1, lim1).astype(dtype)
    lim2 = 1.0 / float(hidden) ** 0.5
    w2 = jax.random.uniform(kw2, (hidden, dim), jnp.float32, -lim2, lim2).astype(dtype)
    b2 = jax.random.uniform(kb2, (dim,), jnp.float32, -lim2, lim2).astype(dtype)
    return gamma, beta, w1, b1, w2, b2


if __name__ == "__main__":
    key = jax.random.PRNGKey(0)
    ks = jax.random.split(key, 6)

    # --- Test 1: tiny f32 shapes, single grid step, fused (weight-resident) path ---
    B, N, D, H = 2, 8, 32, 64
    x = jax.random.normal(ks[0], (B, N, D), dtype=jnp.float32)
    p = _make_params(ks[1], D, H, jnp.float32)
    y = jax.block_until_ready(feedforward_pallas(x, *p))
    y_ref = feedforward_ref(x, *p)
    assert y.shape == (B, N, D)
    assert jnp.allclose(y, y_ref.astype(y.dtype), atol=1e-5, rtol=1e-5), \
        "f32 mismatch vs reference"

    # --- Test 2: bf16, token padding + multiple token tiles, fused path ---
    B, N, D, H = 3, 50, 128, 256
    xb = jax.random.normal(ks[2], (B, N, D), jnp.float32).astype(jnp.bfloat16)
    pb = _make_params(ks[3], D, H, jnp.bfloat16)
    yb = jax.block_until_ready(feedforward_pallas(xb, *pb, tm=64))
    yb_ref = feedforward_ref(xb, *pb)
    assert yb.shape == (B, N, D)
    assert jnp.allclose(yb.astype(jnp.float32), yb_ref, atol=5e-2, rtol=5e-2), \
        "bf16 (fused path) mismatch vs reference"

    # --- Test 3: bf16, forced hidden-streaming path (accumulator + cached LN) ---
    B, N, D, H = 2, 144, 128, 512
    xc = jax.random.normal(ks[4], (B, N, D), jnp.float32).astype(jnp.bfloat16)
    pc = _make_params(ks[5], D, H, jnp.bfloat16)
    yc = jax.block_until_ready(feedforward_pallas(xc, *pc, tm=128, th=256))
    yc_ref = feedforward_ref(xc, *pc)
    assert yc.shape == (B, N, D)
    assert jnp.allclose(yc.astype(jnp.float32), yc_ref, atol=5e-2, rtol=5e-2), \
        "bf16 (tiled path) mismatch vs reference"

    print("KERNEL_OK")
</pallas_src>

<mosaic_0001>
module attributes {stable_mosaic.version = 11 : i64} {
  func.func @_ffn_kernel_fused(%arg0: i32, %arg1: memref<16x32xf32, #tpu.memory_space<vmem>>, %arg2: memref<1x32xf32, #tpu.memory_space<vmem>>, %arg3: memref<1x32xf32, #tpu.memory_space<vmem>>, %arg4: memref<32x64xf32, #tpu.memory_space<vmem>>, %arg5: memref<1x64xf32, #tpu.memory_space<vmem>>, %arg6: memref<64x32xf32, #tpu.memory_space<vmem>>, %arg7: memref<1x32xf32, #tpu.memory_space<vmem>>, %arg8: memref<16x32xf32, #tpu.memory_space<vmem>>) attributes {dimension_semantics = [#tpu.dimension_semantics<parallel>], iteration_bounds = array<i64: 1>, scalar_prefetch = 0 : i64, scratch_operands = 0 : i64, tpu.core_type = #tpu.core_type<tc>, window_params = [{transform_indices = @transform_0, window_bounds = array<i64: 16, 32>}, {pipeline_mode = #tpu.pipeline_mode<synchronous>, transform_indices = @transform_1, window_bounds = array<i64: 1, 32>}, {pipeline_mode = #tpu.pipeline_mode<synchronous>, transform_indices = @transform_2, window_bounds = array<i64: 1, 32>}, {pipeline_mode = #tpu.pipeline_mode<synchronous>, transform_indices = @transform_3, window_bounds = array<i64: 32, 64>}, {pipeline_mode = #tpu.pipeline_mode<synchronous>, transform_indices = @transform_4, window_bounds = array<i64: 1, 64>}, {pipeline_mode = #tpu.pipeline_mode<synchronous>, transform_indices = @transform_5, window_bounds = array<i64: 64, 32>}, {pipeline_mode = #tpu.pipeline_mode<synchronous>, transform_indices = @transform_6, window_bounds = array<i64: 1, 32>}, {transform_indices = @transform_7, window_bounds = array<i64: 16, 32>}]} {
    %c0 = arith.constant 0 : index
    %c0_0 = arith.constant 0 : index
    %0 = vector.load %arg1[%c0, %c0_0] : memref<16x32xf32, #tpu.memory_space<vmem>>, vector<16x32xf32>
    %c0_1 = arith.constant 0 : index
    %c0_2 = arith.constant 0 : index
    %1 = vector.load %arg2[%c0_1, %c0_2] : memref<1x32xf32, #tpu.memory_space<vmem>>, vector<1x32xf32>
    %c0_3 = arith.constant 0 : index
    %c0_4 = arith.constant 0 : index
    %2 = vector.load %arg3[%c0_3, %c0_4] : memref<1x32xf32, #tpu.memory_space<vmem>>, vector<1x32xf32>
    %cst = arith.constant dense<0.000000e+00> : vector<16xf32>
    %3 = vector.multi_reduction <add>, %0, %cst [1] : vector<16x32xf32> to vector<16xf32>
    %4 = vector.shape_cast %3 : vector<16xf32> to vector<16x1xf32>
    %cst_5 = arith.constant 3.200000e+01 : f32
    %5 = vector.broadcast %cst_5 : f32 to vector<16x1xf32>
    %6 = arith.divf %4, %5 : vector<16x1xf32>
    %7 = vector.broadcast %6 : vector<16x1xf32> to vector<16x32xf32>
    %8 = arith.subf %0, %7 : vector<16x32xf32>
    %9 = vector.broadcast %6 : vector<16x1xf32> to vector<16x32xf32>
    %10 = arith.subf %0, %9 : vector<16x32xf32>
    %11 = arith.mulf %8, %10 : vector<16x32xf32>
    %cst_6 = arith.constant dense<0.000000e+00> : vector<16xf32>
    %12 = vector.multi_reduction <add>, %11, %cst_6 [1] : vector<16x32xf32> to vector<16xf32>
    %13 = vector.shape_cast %12 : vector<16xf32> to vector<16x1xf32>
    %cst_7 = arith.constant 3.200000e+01 : f32
    %14 = vector.broadcast %cst_7 : f32 to vector<16x1xf32>
    %15 = arith.divf %13, %14 : vector<16x1xf32>
    %16 = vector.broadcast %6 : vector<16x1xf32> to vector<16x32xf32>
    %17 = arith.subf %0, %16 : vector<16x32xf32>
    %cst_8 = arith.constant 9.99999974E-6 : f32
    %18 = vector.broadcast %cst_8 : f32 to vector<16x1xf32>
    %19 = arith.addf %15, %18 : vector<16x1xf32>
    %20 = math.rsqrt %19 : vector<16x1xf32>
    %21 = vector.broadcast %20 : vector<16x1xf32> to vector<16x32xf32>
    %22 = arith.mulf %17, %21 : vector<16x32xf32>
    %23 = vector.broadcast %1 : vector<1x32xf32> to vector<16x32xf32>
    %24 = arith.mulf %22, %23 : vector<16x32xf32>
    %25 = vector.broadcast %2 : vector<1x32xf32> to vector<16x32xf32>
    %26 = arith.addf %24, %25 : vector<16x32xf32>
    %c0_9 = arith.constant 0 : index
    %c0_10 = arith.constant 0 : index
    %27 = vector.load %arg4[%c0_9, %c0_10] : memref<32x64xf32, #tpu.memory_space<vmem>>, vector<32x64xf32>
    %cst_11 = arith.constant dense<0.000000e+00> : vector<16x64xf32>
    %28 = tpu.matmul %26, %27, %cst_11 {dimension_numbers = #tpu.dot_dimension_numbers<[1], [0], [0], [1], [0, 0, 1, 1], [], []>} : vector<16x32xf32>, vector<32x64xf32>, vector<16x64xf32> -> vector<16x64xf32>
    %c0_12 = arith.constant 0 : index
    %c0_13 = arith.constant 0 : index
    %29 = vector.load %arg5[%c0_12, %c0_13] : memref<1x64xf32, #tpu.memory_space<vmem>>, vector<1x64xf32>
    %30 = vector.broadcast %29 : vector<1x64xf32> to vector<16x64xf32>
    %31 = arith.addf %28, %30 : vector<16x64xf32>
    %cst_14 = arith.constant 5.000000e-01 : f32
    %32 = vector.broadcast %cst_14 : f32 to vector<16x64xf32>
    %33 = arith.mulf %32, %31 : vector<16x64xf32>
    %cst_15 = arith.constant 0.707106769 : f32
    %34 = vector.broadcast %cst_15 : f32 to vector<16x64xf32>
    %35 = arith.mulf %31, %34 : vector<16x64xf32>
    %36 = math.erf %35 : vector<16x64xf32>
    %cst_16 = arith.constant 1.000000e+00 : f32
    %37 = vector.broadcast %cst_16 : f32 to vector<16x64xf32>
    %38 = arith.addf %37, %36 : vector<16x64xf32>
    %39 = arith.mulf %33, %38 : vector<16x64xf32>
    %c0_17 = arith.constant 0 : index
    %c0_18 = arith.constant 0 : index
    %40 = vector.load %arg6[%c0_17, %c0_18] : memref<64x32xf32, #tpu.memory_space<vmem>>, vector<64x32xf32>
    %cst_19 = arith.constant dense<0.000000e+00> : vector<16x32xf32>
    %41 = tpu.matmul %39, %40, %cst_19 {dimension_numbers = #tpu.dot_dimension_numbers<[1], [0], [0], [1], [0, 0, 1, 1], [], []>} : vector<16x64xf32>, vector<64x32xf32>, vector<16x32xf32> -> vector<16x32xf32>
    %c0_20 = arith.constant 0 : index
    %c0_21 = arith.constant 0 : index
    %42 = vector.load %arg7[%c0_20, %c0_21] : memref<1x32xf32, #tpu.memory_space<vmem>>, vector<1x32xf32>
    %43 = vector.broadcast %42 : vector<1x32xf32> to vector<16x32xf32>
    %44 = arith.addf %41, %43 : vector<16x32xf32>
    %c0_22 = arith.constant 0 : index
    %c0_23 = arith.constant 0 : index
    %45 = vector.load %arg8[%c0_22, %c0_23] : memref<16x32xf32, #tpu.memory_space<vmem>>, vector<16x32xf32>
    tpu.vector_store %arg8[%c0_22, %c0_23], %44 {strides = array<i32>} : memref<16x32xf32, #tpu.memory_space<vmem>>, vector<16x32xf32>,
    return
  }
  func.func @transform_0(%arg0: i32) -> (i32, i32) {
    %c0_i32 = arith.constant 0 : i32
    %c0_i32_0 = arith.constant 0 : i32
    return %arg0, %c0_i32 : i32, i32
  }
  func.func @transform_1(%arg0: i32) -> (i32, i32) {
    %c0_i32 = arith.constant 0 : i32
    %c0_i32_0 = arith.constant 0 : i32
    %c0_i32_1 = arith.constant 0 : i32
    return %c0_i32, %c0_i32_0 : i32, i32
  }
  func.func @transform_2(%arg0: i32) -> (i32, i32) {
    %c0_i32 = arith.constant 0 : i32
    %c0_i32_0 = arith.constant 0 : i32
    %c0_i32_1 = arith.constant 0 : i32
    return %c0_i32, %c0_i32_0 : i32, i32
  }
  func.func @transform_3(%arg0: i32) -> (i32, i32) {
    %c0_i32 = arith.constant 0 : i32
    %c0_i32_0 = arith.constant 0 : i32
    %c0_i32_1 = arith.constant 0 : i32
    return %c0_i32, %c0_i32_0 : i32, i32
  }
  func.func @transform_4(%arg0: i32) -> (i32, i32) {
    %c0_i32 = arith.constant 0 : i32
    %c0_i32_0 = arith.constant 0 : i32
    %c0_i32_1 = arith.constant 0 : i32
    return %c0_i32, %c0_i32_0 : i32, i32
  }
  func.func @transform_5(%arg0: i32) -> (i32, i32) {
    %c0_i32 = arith.constant 0 : i32
    %c0_i32_0 = arith.constant 0 : i32
    %c0_i32_1 = arith.constant 0 : i32
    return %c0_i32, %c0_i32_0 : i32, i32
  }
  func.func @transform_6(%arg0: i32) -> (i32, i32) {
    %c0_i32 = arith.constant 0 : i32
    %c0_i32_0 = arith.constant 0 : i32
    %c0_i32_1 = arith.constant 0 : i32
    return %c0_i32, %c0_i32_0 : i32, i32
  }
  func.func @transform_7(%arg0: i32) -> (i32, i32) {
    %c0_i32 = arith.constant 0 : i32
    %c0_i32_0 = arith.constant 0 : i32
    return %arg0, %c0_i32 : i32, i32
  }
}

module attributes {stable_mosaic.version = 11 : i64} {
  func.func @_ffn_kernel_fused(%arg0: i32, %arg1: memref<16x32xf32, #tpu.memory_space<vmem>>, %arg2: memref<1x32xf32, #tpu.memory_space<vmem>>, %arg3: memref<1x32xf32, #tpu.memory_space<vmem>>, %arg4: memref<32x64xf32, #tpu.memory_space<vmem>>, %arg5: memref<1x64xf32, #tpu.memory_space<vmem>>, %arg6: memref<64x32xf32, #tpu.memory_space<vmem>>, %arg7: memref<1x32xf32, #tpu.memory_space<vmem>>, %arg8: memref<16x32xf32, #tpu.memory_space<vmem>>) attributes {dimension_semantics = [#tpu.dimension_semantics<parallel>], iteration_bounds = array<i64: 1>, scalar_prefetch = 0 : i64, scratch_operands = 0 : i64, tpu.core_type = #tpu.core_type<tc>, window_params = [{transform_indices = @transform_0, window_bounds = array<i64: 16, 32>}, {pipeline_mode = #tpu.pipeline_mode<synchronous>, transform_indices = @transform_1, window_bounds = array<i64: 1, 32>}, {pipeline_mode = #tpu.pipeline_mode<synchronous>, transform_indices = @transform_2, window_bounds = array<i64: 1, 32>}, {pipeline_mode = #tpu.pipeline_mode<synchronous>, transform_indices = @transform_3, window_bounds = array<i64: 32, 64>}, {pipeline_mode = #tpu.pipeline_mode<synchronous>, transform_indices = @transform_4, window_bounds = array<i64: 1, 64>}, {pipeline_mode = #tpu.pipeline_mode<synchronous>, transform_indices = @transform_5, window_bounds = array<i64: 64, 32>}, {pipeline_mode = #tpu.pipeline_mode<synchronous>, transform_indices = @transform_6, window_bounds = array<i64: 1, 32>}, {transform_indices = @transform_7, window_bounds = array<i64: 16, 32>}]} {
    %c0 = arith.constant 0 : index
    %c0_0 = arith.constant 0 : index
    %0 = vector.load %arg1[%c0, %c0_0] : memref<16x32xf32, #tpu.memory_space<vmem>>, vector<16x32xf32>
    %c0_1 = arith.constant 0 : index
    %c0_2 = arith.constant 0 : index
    %1 = vector.load %arg2[%c0_1, %c0_2] : memref<1x32xf32, #tpu.memory_space<vmem>>, vector<1x32xf32>
    %c0_3 = arith.constant 0 : index
    %c0_4 = arith.constant 0 : index
    %2 = vector.load %arg3[%c0_3, %c0_4] : memref<1x32xf32, #tpu.memory_space<vmem>>, vector<1x32xf32>
    %cst = arith.constant dense<0.000000e+00> : vector<16xf32>
    %3 = vector.multi_reduction <add>, %0, %cst [1] : vector<16x32xf32> to vector<16xf32>
    %4 = vector.shape_cast %3 : vector<16xf32> to vector<16x1xf32>
    %cst_5 = arith.constant 3.200000e+01 : f32
    %5 = vector.broadcast %cst_5 : f32 to vector<16x1xf32>
    %6 = arith.divf %4, %5 : vector<16x1xf32>
    %7 = vector.broadcast %6 : vector<16x1xf32> to vector<16x32xf32>
    %8 = arith.subf %0, %7 : vector<16x32xf32>
    %9 = vector.broadcast %6 : vector<16x1xf32> to vector<16x32xf32>
    %10 = arith.subf %0, %9 : vector<16x32xf32>
    %11 = arith.mulf %8, %10 : vector<16x32xf32>
    %cst_6 = arith.constant dense<0.000000e+00> : vector<16xf32>
    %12 = vector.multi_reduction <add>, %11, %cst_6 [1] : vector<16x32xf32> to vector<16xf32>
    %13 = vector.shape_cast %12 : vector<16xf32> to vector<16x1xf32>
    %cst_7 = arith.constant 3.200000e+01 : f32
    %14 = vector.broadcast %cst_7 : f32 to vector<16x1xf32>
    %15 = arith.divf %13, %14 : vector<16x1xf32>
    %16 = vector.broadcast %6 : vector<16x1xf32> to vector<16x32xf32>
    %17 = arith.subf %0, %16 : vector<16x32xf32>
    %cst_8 = arith.constant 9.99999974E-6 : f32
    %18 = vector.broadcast %cst_8 : f32 to vector<16x1xf32>
    %19 = arith.addf %15, %18 : vector<16x1xf32>
    %20 = math.rsqrt %19 : vector<16x1xf32>
    %21 = vector.broadcast %20 : vector<16x1xf32> to vector<16x32xf32>
    %22 = arith.mulf %17, %21 : vector<16x32xf32>
    %23 = vector.broadcast %1 : vector<1x32xf32> to vector<16x32xf32>
    %24 = arith.mulf %22, %23 : vector<16x32xf32>
    %25 = vector.broadcast %2 : vector<1x32xf32> to vector<16x32xf32>
    %26 = arith.addf %24, %25 : vector<16x32xf32>
    %c0_9 = arith.constant 0 : index
    %c0_10 = arith.constant 0 : index
    %27 = vector.load %arg4[%c0_9, %c0_10] : memref<32x64xf32, #tpu.memory_space<vmem>>, vector<32x64xf32>
    %cst_11 = arith.constant dense<0.000000e+00> : vector<16x64xf32>
    %28 = tpu.matmul %26, %27, %cst_11 {dimension_numbers = #tpu.dot_dimension_numbers<[1], [0], [0], [1], [0, 0, 1, 1], [], []>} : vector<16x32xf32>, vector<32x64xf32>, vector<16x64xf32> -> vector<16x64xf32>
    %c0_12 = arith.constant 0 : index
    %c0_13 = arith.constant 0 : index
    %29 = vector.load %arg5[%c0_12, %c0_13] : memref<1x64xf32, #tpu.memory_space<vmem>>, vector<1x64xf32>
    %30 = vector.broadcast %29 : vector<1x64xf32> to vector<16x64xf32>
    %31 = arith.addf %28, %30 : vector<16x64xf32>
    %cst_14 = arith.constant 5.000000e-01 : f32
    %32 = vector.broadcast %cst_14 : f32 to vector<16x64xf32>
    %33 = arith.mulf %32, %31 : vector<16x64xf32>
    %cst_15 = arith.constant 0.707106769 : f32
    %34 = vector.broadcast %cst_15 : f32 to vector<16x64xf32>
    %35 = arith.mulf %31, %34 : vector<16x64xf32>
    %36 = math.erf %35 : vector<16x64xf32>
    %cst_16 = arith.constant 1.000000e+00 : f32
    %37 = vector.broadcast %cst_16 : f32 to vector<16x64xf32>
    %38 = arith.addf %37, %36 : vector<16x64xf32>
    %39 = arith.mulf %33, %38 : vector<16x64xf32>
    %c0_17 = arith.constant 0 : index
    %c0_18 = arith.constant 0 : index
    %40 = vector.load %arg6[%c0_17, %c0_18] : memref<64x32xf32, #tpu.memory_space<vmem>>, vector<64x32xf32>
    %cst_19 = arith.constant dense<0.000000e+00> : vector<16x32xf32>
    %41 = tpu.matmul %39, %40, %cst_19 {dimension_numbers = #tpu.dot_dimension_numbers<[1], [0], [0], [1], [0, 0, 1, 1], [], []>} : vector<16x64xf32>, vector<64x32xf32>, vector<16x32xf32> -> vector<16x32xf32>
    %c0_20 = arith.constant 0 : index
    %c0_21 = arith.constant 0 : index
    %42 = vector.load %arg7[%c0_20, %c0_21] : memref<1x32xf32, #tpu.memory_space<vmem>>, vector<1x32xf32>
    %43 = vector.broadcast %42 : vector<1x32xf32> to vector<16x32xf32>
    %44 = arith.addf %41, %43 : vector<16x32xf32>
    %c0_22 = arith.constant 0 : index
    %c0_23 = arith.constant 0 : index
    %45 = vector.load %arg8[%c0_22, %c0_23] : memref<16x32xf32, #tpu.memory_space<vmem>>, vector<16x32xf32>
    tpu.vector_store %arg8[%c0_22, %c0_23], %44 {strides = array<i32>} : memref<16x32xf32, #tpu.memory_space<vmem>>, vector<16x32xf32>,
    return
  }
  func.func @transform_0(%arg0: i32) -> (i32, i32) {
    %c0_i32 = arith.constant 0 : i32
    %c0_i32_0 = arith.constant 0 : i32
    return %arg0, %c0_i32 : i32, i32
  }
  func.func @transform_1(%arg0: i32) -> (i32, i32) {
    %c0_i32 = arith.constant 0 : i32
    %c0_i32_0 = arith.constant 0 : i32
    %c0_i32_1 = arith.constant 0 : i32
    return %c0_i32, %c0_i32_0 : i32, i32
  }
  func.func @transform_2(%arg0: i32) -> (i32, i32) {
    %c0_i32 = arith.constant 0 : i32
    %c0_i32_0 = arith.constant 0 : i32
    %c0_i32_1 = arith.constant 0 : i32
    return %c0_i32, %c0_i32_0 : i32, i32
  }
  func.func @transform_3(%arg0: i32) -> (i32, i32) {
    %c0_i32 = arith.constant 0 : i32
    %c0_i32_0 = arith.constant 0 : i32
    %c0_i32_1 = arith.constant 0 : i32
    return %c0_i32, %c0_i32_0 : i32, i32
  }
  func.func @transform_4(%arg0: i32) -> (i32, i32) {
    %c0_i32 = arith.constant 0 : i32
    %c0_i32_0 = arith.constant 0 : i32
    %c0_i32_1 = arith.constant 0 : i32
    return %c0_i32, %c0_i32_0 : i32, i32
  }
  func.func @transform_5(%arg0: i32) -> (i32, i32) {
    %c0_i32 = arith.constant 0 : i32
    %c0_i32_0 = arith.constant 0 : i32
    %c0_i32_1 = arith.constant 0 : i32
    return %c0_i32, %c0_i32_0 : i32, i32
  }
  func.func @transform_6(%arg0: i32) -> (i32, i32) {
    %c0_i32 = arith.constant 0 : i32
    %c0_i32_0 = arith.constant 0 : i32
    %c0_i32_1 = arith.constant 0 : i32
    return %c0_i32, %c0_i32_0 : i32, i32
  }
  func.func @transform_7(%arg0: i32) -> (i32, i32) {
    %c0_i32 = arith.constant 0 : i32
    %c0_i32_0 = arith.constant 0 : i32
    return %arg0, %c0_i32 : i32, i32
  }
}

</mosaic_0001>

<bundles_post_ra>
// kernel: tpu_custom_call.1
= control target key start
LH: loop header
LB: loop body
LE: loop exit
PB: predicated region body
PF: predicated region fallthrough
CT: control target
= control target key end

     0   :  { %12 = vsyncpa [#allocation3], 0  ;;  %s831_s0 = inlined_call_operand.hbm [shape: f32[16,32], index: 0, kind: input, shape index: {}]   ;;  %s832_s1 = inlined_call_operand.hbm [shape: f32[1,32], index: 1, kind: input, shape index: {}]   ;;  %s833_s2 = inlined_call_operand.hbm [shape: f32[1,32], index: 2, kind: input, shape index: {}]   ;;  %s834_s3 = inlined_call_operand.hbm [shape: f32[32,64], index: 3, kind: input, shape index: {}]   ;;  %s835_s4 = inlined_call_operand.hbm [shape: f32[1,64], index: 4, kind: input, shape index: {}]   ;;  %s836_s5 = inlined_call_operand.hbm [shape: f32[64,32], index: 5, kind: input, shape index: {}]   ;;  %s837_s6 = inlined_call_operand.hbm [shape: f32[1,32], index: 6, kind: input, shape index: {}]   ;;  %s838_s7 = inlined_call_operand.hbm [shape: f32[16,32], index: 7, kind: output, shape index: {}]  }
   0x1   :  { %13 = vsyncpa [#allocation6], 0 }
   0x2   :  { %14 = vsyncpa [#allocation9], 0 }
   0x3   :  { %15 = vsyncpa [#allocation12], 0 }
   0x4   :  { %16 = vsyncpa [#allocation4], 0  ;;  %s665_s24 = smov [#allocation5]   ;;  %s479_s28 = scalar_lea.hbm %s832_s1, 16 }
   0x5   :  { %s35_s25 = sshll.u32 %s665_s24, 4  ;;  %p480_p0 = scmp.ne.s32.totalorder %s832_s1, %s479_s28  ;;  %s36_s25 = int_to_ptr.vmem [resolvable:$true] %s35_s25 }
   0x6   :  { %p483_p1 = scmp.lt.u32.totalorder %s479_s28, %s832_s1 }
   0x8   :  { %p485_p2 = pnand %p483_p1, %p480_p0 }
   0xa   :  { %488 = shalt.err (!%p485_p2)
}
   0xb   :  { %s489_s10 = scalar_lea.vmem %s36_s25, 16  ;;  %s493_s11 = scalar_lea.vmem %s36_s25, 32 }
   0xc   :  { %p490_p3 = scmp.ne.s32.totalorder %s36_s25, %s489_s10  ;;  %p494_p4 = scmp.lt.s32.totalorder %s36_s25, %s36_s25 }
   0xd   :  { %p495_p5 = scmp.lt.s32.totalorder %s493_s11, %s489_s10 }
   0xf   :  { %p496_p6 = por %p495_p5, %p494_p4 }
  0x11   :  { %p497_p7 = pnand %p496_p6, %p490_p3 }
  0x13   :  { %500 = shalt.err (!%p497_p7)
}
  0x14   :  { %38 = dma.hbm_to_vmem [thread:$0]  %s832_s1, 16, %s36_s25, [#allocation6]  }
  0x15   :  { %s666_s14 = smov [#allocation8]   ;;  %s667_s16 = smov [#allocation11]  }
  0x16   :  { %s54_s15 = sshll.u32 %s666_s14, 4  ;;  %s76_s17 = sshll.u32 %s667_s16, 4  ;;  %s55_s15 = int_to_ptr.vmem [resolvable:$true] %s54_s15  ;;  %s77_s17 = int_to_ptr.vmem [resolvable:$true] %s76_s17 }
  0x17   :  { %s501_s20 = scalar_lea.hbm %s834_s3, 512 }
  0x18   :  { %p502_p8 = scmp.ne.s32.totalorder %s834_s3, %s501_s20  ;;  %p505_p9 = scmp.lt.u32.totalorder %s501_s20, %s834_s3 }
  0x1a   :  { %p507_p10 = pnand %p505_p9, %p502_p8 }
  0x1c   :  { %510 = shalt.err (!%p507_p10)
}
  0x1d   :  { %s511_s1 = scalar_lea.vmem %s55_s15, 512  ;;  %p516_p12 = scmp.lt.s32.totalorder %s55_s15, %s55_s15 }
  0x1e   :  { %p512_p11 = scmp.ne.s32.totalorder %s55_s15, %s511_s1  ;;  %p517_p13 = scmp.lt.s32.totalorder %s511_s1, %s511_s1 }
  0x20   :  { %p518_p0 = por %p517_p13, %p516_p12 }
  0x22   :  { %p519_p1 = pnand %p518_p0, %p512_p11 }
  0x24   :  { %522 = shalt.err (!%p519_p1)
}
  0x25   :  { %s668_s25 = smov 128   ;;  %s669_s26 = smov 8  }
  0x26   :  { %60 = dma.hbm_to_vmem [thread:$0]  %s834_s3, 512, %s55_s15, [#allocation9], %s668_s25, %s668_s25, %s669_s26  }
  0x27   :  { %s523_s8 = scalar_lea.hbm %s836_s5, 1024 }
  0x28   :  { %p524_p2 = scmp.ne.s32.totalorder %s836_s5, %s523_s8  ;;  %p527_p3 = scmp.lt.u32.totalorder %s523_s8, %s836_s5 }
  0x2a   :  { %p529_p4 = pnand %p527_p3, %p524_p2 }
  0x2c   :  { %532 = shalt.err (!%p529_p4)
}
  0x2d   :  { %s533_s13 = scalar_lea.vmem %s77_s17, 1024  ;;  %p538_p6 = scmp.lt.s32.totalorder %s77_s17, %s77_s17 }
  0x2e   :  { %p534_p5 = scmp.ne.s32.totalorder %s77_s17, %s533_s13  ;;  %p539_p7 = scmp.lt.s32.totalorder %s533_s13, %s533_s13 }
  0x30   :  { %p540_p8 = por %p539_p7, %p538_p6 }
  0x32   :  { %p541_p9 = pnand %p540_p8, %p534_p5 }
  0x34   :  { %544 = shalt.err (!%p541_p9)
}
  0x35   :  { %82 = dma.hbm_to_vmem [thread:$0]  %s836_s5, 1024, %s77_s17, [#allocation12], %s668_s25, %s668_s25, %s669_s26  }
  0x36   :  { %s670_s15 = smov [#allocation2]   ;;  %s671_s18 = smov [#allocation7]  }
  0x37   :  { %s22_s16 = sshll.u32 %s670_s15, 4  ;;  %s45_s19 = sshll.u32 %s671_s18, 4  ;;  %s23_s16 = int_to_ptr.vmem [resolvable:$true] %s22_s16  ;;  %s46_s19 = int_to_ptr.vmem [resolvable:$true] %s45_s19 }
  0x38   :  { %s545_s22 = scalar_lea.hbm %s831_s0, 256 }
  0x39   :  { %p546_p10 = scmp.ne.s32.totalorder %s831_s0, %s545_s22  ;;  %p549_p11 = scmp.lt.u32.totalorder %s545_s22, %s831_s0 }
  0x3b   :  { %p551_p12 = pnand %p549_p11, %p546_p10 }
  0x3d   :  { %554 = shalt.err (!%p551_p12)
}
  0x3e   :  { %s555_s5 = scalar_lea.vmem %s23_s16, 256  ;;  %p560_p0 = scmp.lt.s32.totalorder %s23_s16, %s23_s16 }
  0x3f   :  { %p556_p13 = scmp.ne.s32.totalorder %s23_s16, %s555_s5  ;;  %p561_p1 = scmp.lt.s32.totalorder %s555_s5, %s555_s5 }
  0x41   :  { %p562_p2 = por %p561_p1, %p560_p0 }
  0x43   :  { %p563_p3 = pnand %p562_p2, %p556_p13 }
  0x45   :  { %566 = shalt.err (!%p563_p3)
}
  0x46   :  { %28 = dma.hbm_to_vmem [thread:$0]  %s831_s0, 256, %s23_s16, [#allocation3], %s668_s25, %s668_s25, %s669_s26  }
  0x47   :  { %s567_s8 = scalar_lea.hbm %s833_s2, 16 }
  0x48   :  { %p568_p4 = scmp.ne.s32.totalorder %s833_s2, %s567_s8  ;;  %p571_p5 = scmp.lt.u32.totalorder %s567_s8, %s833_s2 }
  0x4a   :  { %p573_p6 = pnand %p571_p5, %p568_p4 }
  0x4c   :  { %576 = shalt.err (!%p573_p6)
}
  0x4d   :  { %s577_s13 = scalar_lea.vmem %s46_s19, 16  ;;  %s581_s3 = scalar_lea.vmem %s46_s19, 32 }
  0x4e   :  { %p578_p7 = scmp.ne.s32.totalorder %s46_s19, %s577_s13  ;;  %p582_p8 = scmp.lt.s32.totalorder %s46_s19, %s46_s19 }
  0x4f   :  { %p583_p9 = scmp.lt.s32.totalorder %s581_s3, %s577_s13 }
  0x51   :  { %p584_p10 = por %p583_p9, %p582_p8 }
  0x53   :  { %p585_p11 = pnand %p584_p10, %p578_p7 }
  0x55   :  { %588 = shalt.err (!%p585_p11)
}
  0x56   :  { %48 = dma.hbm_to_vmem [thread:$0]  %s833_s2, 16, %s46_s19, [#allocation6]  }
  0x57   :  { %s672_s15 = smov [#allocation10]   ;;  %s673_s18 = smov [#allocation13]  }
  0x58   :  { %s67_s16 = sshll.u32 %s672_s15, 4  ;;  %s89_s20 = sshll.u32 %s673_s18, 4  ;;  %s68_s16 = int_to_ptr.vmem [resolvable:$true] %s67_s16  ;;  %s90_s20 = int_to_ptr.vmem [resolvable:$true] %s89_s20 }
  0x59   :  { %s589_s23 = scalar_lea.hbm %s835_s4, 16 }
  0x5a   :  { %p590_p12 = scmp.ne.s32.totalorder %s835_s4, %s589_s23  ;;  %p593_p13 = scmp.lt.u32.totalorder %s589_s23, %s835_s4 }
  0x5c   :  { %p595_p0 = pnand %p593_p13, %p590_p12 }
  0x5e   :  { %598 = shalt.err (!%p595_p0)
}
  0x5f   :  { %s599_s2 = scalar_lea.vmem %s68_s16, 16  ;;  %s603_s19 = scalar_lea.vmem %s68_s16, 32 }
  0x60   :  { %p600_p1 = scmp.ne.s32.totalorder %s68_s16, %s599_s2  ;;  %p604_p2 = scmp.lt.s32.totalorder %s68_s16, %s68_s16 }
  0x61   :  { %p605_p3 = scmp.lt.s32.totalorder %s603_s19, %s599_s2 }
  0x63   :  { %p606_p4 = por %p605_p3, %p604_p2 }
  0x65   :  { %p607_p5 = pnand %p606_p4, %p600_p1 }
  0x67   :  { %610 = shalt.err (!%p607_p5)
}
  0x68   :  { %70 = dma.hbm_to_vmem [thread:$0]  %s835_s4, 16, %s68_s16, [#allocation9]  }
  0x69   :  { %s611_s8 = scalar_lea.hbm %s837_s6, 16 }
  0x6a   :  { %p612_p6 = scmp.ne.s32.totalorder %s837_s6, %s611_s8  ;;  %p615_p7 = scmp.lt.u32.totalorder %s611_s8, %s837_s6 }
  0x6c   :  { %p617_p8 = pnand %p615_p7, %p612_p6 }
  0x6e   :  { %620 = shalt.err (!%p617_p8)
}
  0x6f   :  { %s621_s13 = scalar_lea.vmem %s90_s20, 16  ;;  %s625_s3 = scalar_lea.vmem %s90_s20, 32 }
  0x70   :  { %p622_p9 = scmp.ne.s32.totalorder %s90_s20, %s621_s13  ;;  %p626_p10 = scmp.lt.s32.totalorder %s90_s20, %s90_s20 }
  0x71   :  { %p627_p11 = scmp.lt.s32.totalorder %s625_s3, %s621_s13 }
  0x73   :  { %p628_p12 = por %p627_p11, %p626_p10 }
  0x75   :  { %p629_p13 = pnand %p628_p12, %p622_p9 }
  0x77   :  { %632 = shalt.err (!%p629_p13)
}
  0x78   :  { %92 = dma.hbm_to_vmem [thread:$0]  %s837_s6, 16, %s90_s20, [#allocation12]  }
  0x79   :  { %655 = dma.done.wait [#allocation3], 256  }
  0x7a   :  { %656 = vsyncadd [#allocation3], 4294967040 }
  0x7b   :  { %657 = dma.done.wait [#allocation6], 32  }
  0x7c   :  { %658 = vsyncadd [#allocation6], 4294967264 }
  0x7d   :  { %659 = dma.done.wait [#allocation9], 528  }
  0x7e   :  { %660 = vsyncadd [#allocation9], 4294966768 }
  0x7f   :  { %661 = dma.done.wait [#allocation12], 1040  }
  0x80   :  { %662 = vsyncadd [#allocation12], 4294966256  ;;  %vm118_vm0 = vcmask 261120   ;;  %v114_v0 = vld [vmem:[#allocation2] sm:$0xff]  ;;  %v115_v1 = vld [vmem:[#allocation2 + $0x8] sm:$0xff]  ;;  %vm279_vm1 = vcmask 523264  }
  0x81   :  { %v119_v2 = vsel %vm118_vm0, %v114_v0, 0.0  ;;  %v122_v3 = vsel %vm118_vm0, %v115_v1, 0.0  ;;  %v162_v14 = vld [vmem:[#allocation8] sm:$0xff]  ;;  %v163_v15 = vld [vmem:[#allocation8 + $0x8] sm:$0xff]  ;;  %v164_v16 = vld [vmem:[#allocation8 + $0x10] sm:$0xff]  ;;  %s674_s6 = smov [#allocation14]  }
  0x82   :  { %120 = vadd.xlane.f32.xlu0 %v119_v2  ;;  %v437_v17 = vpack.c.bf16 %v163_v15, %v162_v14  ;;  %v165_v18 = vld [vmem:[#allocation8 + $0x18] sm:$0xff]  ;;  %v264_v36 = vld [vmem:[#allocation11] sm:$0xff]  ;;  %v265_v37 = vld [vmem:[#allocation11 + $0x8] sm:$0xff]  ;;  %s368_s14 = sshll.u32 %s674_s6, 4  ;;  %s369_s14 = int_to_ptr.vmem [resolvable:$true] %s368_s14 }
  0x83   :  { %v441_v19 = vpack.c.bf16 %v165_v18, %v164_v16  ;;  %v383_v27 = vld [vmem:[#allocation5] ss:$0 sm:$0xff]  ;;  %v384_v29 = vld [vmem:[#allocation7] ss:$0 sm:$0xff]  ;;  %v445_v38 = vpack.c.bf16 %v265_v37, %v264_v36  ;;  %v266_v39 = vld [vmem:[#allocation11 + $0x10] sm:$0xff]  ;;  %s633_s15 = scalar_lea.vmem %s369_s14, 256  ;;  %p638_p1 = scmp.lt.s32.totalorder %s369_s14, %s369_s14 }
  0x84   :  { %438 = vmatprep.subr.bf16.mxu0 %v437_v17  ;;  %v267_v40 = vld [vmem:[#allocation11 + $0x18] sm:$0xff]  ;;  %v268_v42 = vld [vmem:[#allocation11 + $0x20] sm:$0xff]  ;;  %v269_v43 = vld [vmem:[#allocation11 + $0x28] sm:$0xff]  ;;  %p634_p0 = scmp.ne.s32.totalorder %s369_s14, %s633_s15  ;;  %p639_p2 = scmp.lt.s32.totalorder %s633_s15, %s633_s15 }
  0x85   :  { %440 = vmatpush3.bf16.msra.mxu0 %v437_v17  ;;  %446 = vmatprep.subr.bf16.mxu1 %v445_v38  ;;  %v449_v41 = vpack.c.bf16 %v267_v40, %v266_v39  ;;  %v453_v44 = vpack.c.bf16 %v269_v43, %v268_v42  ;;  %v270_v45 = vld [vmem:[#allocation11 + $0x30] sm:$0xff]  ;;  %v271_v46 = vld [vmem:[#allocation11 + $0x38] sm:$0xff]  ;;  %v388_v63 = vld [vmem:[#allocation13] ss:$0 sm:$0xff] }
  0x86   :  { %123 = vadd.xlane.f32.xlu0 %v122_v3  ;;  %442 = vmatprep.subr.bf16.mxu0 %v441_v19  ;;  %v457_v47 = vpack.c.bf16 %v271_v46, %v270_v45  ;;  %v385_v48 = vld [vmem:[#allocation10] ss:$0 sm:$0xff]  ;;  %p640_p3 = por %p639_p2, %p638_p1 }
  0x87   :  { %448 = vmatpush3.bf16.msra.mxu1 %v445_v38 }
  0x88   :  { %450 = vmatprep.subr.bf16.mxu1 %v449_v41  ;;  %p641_p4 = pnand %p640_p3, %p634_p0 }
  0x89   :  { %444 = vmatpush3.bf16.msra.mxu0 %v441_v19 }
  0x8b   :  { %452 = vmatpush3.bf16.msra.mxu1 %v449_v41 }
  0x8c   :  { %454 = vmatprep.subr.bf16.mxu1 %v453_v44 }
  0x8f   :  { %456 = vmatpush3.bf16.msra.mxu1 %v453_v44 }
  0x90   :  { %458 = vmatprep.subr.bf16.mxu1 %v457_v47 }
  0x93   :  { %460 = vmatpush3.bf16.msra.mxu1 %v457_v47 }
 0x10f   :  { %v121_v4 = vpop.xlane.xlu0 %120 }
 0x110   :  { %v126_v5 = vmul.f32 0.03125, %v121_v4 }
 0x112   :  { %v128_v6 = vsub.f32 %v114_v0, %v126_v5 }
 0x113   :  { %v124_v7 = vpop.xlane.xlu0 %123 }
 0x114   :  { %v127_v8 = vmul.f32 0.03125, %v124_v7  ;;  %v130_v9 = vmul.f32 %v128_v6, %v128_v6 }
 0x116   :  { %v129_v10 = vsub.f32 %v115_v1, %v127_v8  ;;  %v132_v11 = vsel %vm118_vm0, %v130_v9, 0.0 }
 0x117   :  { %133 = vadd.xlane.f32.xlu1 %v132_v11 }
 0x118   :  { %v131_v12 = vmul.f32 %v129_v10, %v129_v10 }
 0x11a   :  { %v135_v13 = vsel %vm118_vm0, %v131_v12, 0.0 }
 0x11b   :  { %136 = vadd.xlane.f32.xlu1 %v135_v13 }
 0x1a4   :  { %v134_v20 = vpop.xlane.xlu1 %133 }
 0x1a5   :  { %v138_v21 = vmul.f32 0.03125, %v134_v20 }
 0x1a7   :  { %v140_v22 = vadd.f32 1e-05, %v138_v21 }
 0x1a8   :  { %v137_v23 = vpop.xlane.xlu1 %136 }
 0x1a9   :  { %471 = vrsqrt.f32 %v140_v22  ;;  %v139_v24 = vmul.f32 0.03125, %v137_v23 }
 0x1ab   :  { %v141_v25 = vadd.f32 1e-05, %v139_v24 }
 0x1ad   :  { %473 = vrsqrt.f32 %v141_v25 }
 0x1b3   :  { %v472_v26 = vpop.eup %471 }
 0x1b4   :  { %v144_v28 = vmul.f32 %v472_v26, %v128_v6 }
 0x1b6   :  { %v152_v30 = vmul.f32 %v383_v27, %v144_v28 }
 0x1b7   :  { %v474_v31 = vpop.eup %473 }
 0x1b8   :  { %v145_v32 = vmul.f32 %v474_v31, %v129_v10  ;;  %v160_v33 = vadd.f32 %v384_v29, %v152_v30 }
 0x1ba   :  { %v153_v34 = vmul.f32 %v383_v27, %v145_v32  ;;  %415 = vmatprep.mubr.msk.f32.mxu0 %vm118_vm0, %v160_v33 }
 0x1bc   :  { %v161_v35 = vadd.f32 %v384_v29, %v153_v34 }
 0x1be   :  { %416 = vmatmul.mubr.msk.f32.vlgmr.msra.gmra.mrb[0].mxu0 %vm118_vm0, %v161_v35 }
 0x291   :  { %v417_v49 = vpop.f32.mrb[0].mxu0 }
 0x292   :  { %v251_v50 = vadd.f32 %v417_v49, %v385_v48  ;;  %v245_v51 = vpop.f32.mrb[1].mxu0 }
 0x293   :  { %v246_v52 = vadd.f32 %v385_v48, %v245_v51 }
 0x294   :  { %v257_v53 = vmul.f32 0.70710677, %v251_v50  ;;  %v255_v60 = vmul.f32 0.5, %v251_v50 }
 0x295   :  { %v256_v54 = vmul.f32 0.70710677, %v246_v52  ;;  %v254_v58 = vmul.f32 0.5, %v246_v52 }
 0x296   :  { %475 = verf.f32 %v257_v53 }
 0x297   :  { %477 = verf.f32 %v256_v54 }
 0x2a0   :  { %v476_v55 = vpop.eup %475 }
 0x2a1   :  { %v478_v56 = vpop.eup %477  ;;  %v261_v57 = vadd.f32 1.0, %v476_v55 }
 0x2a2   :  { %v260_v59 = vadd.f32 1.0, %v478_v56 }
 0x2a3   :  { %v263_v62 = vmul.f32 %v261_v57, %v255_v60 }
 0x2a4   :  { %v262_v61 = vmul.f32 %v260_v59, %v254_v58 }
 0x2a6   :  { %434 = vmatprep.mubr.msk.f32.mxu1 %vm279_vm1, %v262_v61 }
 0x2a7   :  { %435 = vmatmul.mubr.msk.f32.vlgmr.msra.gmra.mrb[0].mxu1 %vm279_vm1, %v263_v62 }
 0x37a   :  { %v436_v0 = vpop.f32.mrb[0].mxu1 }
 0x37b   :  { %v358_v1 = vadd.f32 %v436_v0, %v388_v63  ;;  %v352_v2 = vpop.f32.mrb[1].mxu1 }
 0x37c   :  { %v353_v3 = vadd.f32 %v388_v63, %v352_v2 }
 0x37d   :  { %362 = vst.msk [vmem:[#allocation14 + $0x8] sm:$0xff] %vm118_vm0, %v358_v1 }
 0x37e   :  { %361 = vst.msk [vmem:[#allocation14] sm:$0xff] %vm118_vm0, %v353_v3 }
 0x37f   :  { %644 = shalt.err (!%p641_p4)
}
 0x380   :  { %s645_s20 = scalar_lea.hbm %s838_s7, 256 }
 0x381   :  { %p646_p5 = scmp.ne.s32.totalorder %s838_s7, %s645_s20  ;;  %p649_p6 = scmp.lt.u32.totalorder %s645_s20, %s838_s7 }
 0x383   :  { %p651_p7 = pnand %p649_p6, %p646_p5 }
 0x385   :  { %654 = shalt.err (!%p651_p7)
}
 0x386   :  { %374 = dma.vmem_to_hbm [thread:$0]  %s369_s14, 256, %s838_s7, [#allocation4], %s668_s25, %s668_s25, %s669_s26  }
 0x387   :  { %663 = dma.done.wait [#allocation4], 256  }
 0x388   :  { %664 = vsyncadd [#allocation4], 4294967040 }
 0x389   :  { %378 = vsyncpa [#allocation3], 1 }
 0x38a   :  { %379 = vsyncpa [#allocation6], 1 }
 0x38b   :  { %380 = vsyncpa [#allocation9], 1 }
 0x38c   :  { %381 = vsyncpa [#allocation12], 1 }
 0x38d   :  { %382 = vsyncpa [#allocation4], 1 }

// kernel: tpu_custom_call.1
= control target key start
LH: loop header
LB: loop body
LE: loop exit
PB: predicated region body
PF: predicated region fallthrough
CT: control target
= control target key end

     0   :  { %12 = vsyncpa [#allocation3], 0  ;;  %s831_s0 = inlined_call_operand.hbm [shape: f32[16,32], index: 0, kind: input, shape index: {}]   ;;  %s832_s1 = inlined_call_operand.hbm [shape: f32[1,32], index: 1, kind: input, shape index: {}]   ;;  %s833_s2 = inlined_call_operand.hbm [shape: f32[1,32], index: 2, kind: input, shape index: {}]   ;;  %s834_s3 = inlined_call_operand.hbm [shape: f32[32,64], index: 3, kind: input, shape index: {}]   ;;  %s835_s4 = inlined_call_operand.hbm [shape: f32[1,64], index: 4, kind: input, shape index: {}]   ;;  %s836_s5 = inlined_call_operand.hbm [shape: f32[64,32], index: 5, kind: input, shape index: {}]   ;;  %s837_s6 = inlined_call_operand.hbm [shape: f32[1,32], index: 6, kind: input, shape index: {}]   ;;  %s838_s7 = inlined_call_operand.hbm [shape: f32[16,32], index: 7, kind: output, shape index: {}]  }
   0x1   :  { %13 = vsyncpa [#allocation6], 0 }
   0x2   :  { %14 = vsyncpa [#allocation9], 0 }
   0x3   :  { %15 = vsyncpa [#allocation12], 0 }
   0x4   :  { %16 = vsyncpa [#allocation4], 0  ;;  %s665_s24 = smov [#allocation5]   ;;  %s479_s28 = scalar_lea.hbm %s832_s1, 16 }
   0x5   :  { %s35_s25 = sshll.u32 %s665_s24, 4  ;;  %p480_p0 = scmp.ne.s32.totalorder %s832_s1, %s479_s28  ;;  %s36_s25 = int_to_ptr.vmem [resolvable:$true] %s35_s25 }
   0x6   :  { %p483_p1 = scmp.lt.u32.totalorder %s479_s28, %s832_s1 }
   0x8   :  { %p485_p2 = pnand %p483_p1, %p480_p0 }
   0xa   :  { %488 = shalt.err (!%p485_p2)
}
   0xb   :  { %s489_s10 = scalar_lea.vmem %s36_s25, 16  ;;  %s493_s11 = scalar_lea.vmem %s36_s25, 32 }
   0xc   :  { %p490_p3 = scmp.ne.s32.totalorder %s36_s25, %s489_s10  ;;  %p494_p4 = scmp.lt.s32.totalorder %s36_s25, %s36_s25 }
   0xd   :  { %p495_p5 = scmp.lt.s32.totalorder %s493_s11, %s489_s10 }
   0xf   :  { %p496_p6 = por %p495_p5, %p494_p4 }
  0x11   :  { %p497_p7 = pnand %p496_p6, %p490_p3 }
  0x13   :  { %500 = shalt.err (!%p497_p7)
}
  0x14   :  { %38 = dma.hbm_to_vmem [thread:$0]  %s832_s1, 16, %s36_s25, [#allocation6]  }
  0x15   :  { %s666_s14 = smov [#allocation8]   ;;  %s667_s16 = smov [#allocation11]  }
  0x16   :  { %s54_s15 = sshll.u32 %s666_s14, 4  ;;  %s76_s17 = sshll.u32 %s667_s16, 4  ;;  %s55_s15 = int_to_ptr.vmem [resolvable:$true] %s54_s15  ;;  %s77_s17 = int_to_ptr.vmem [resolvable:$true] %s76_s17 }
  0x17   :  { %s501_s20 = scalar_lea.hbm %s834_s3, 512 }
  0x18   :  { %p502_p8 = scmp.ne.s32.totalorder %s834_s3, %s501_s20  ;;  %p505_p9 = scmp.lt.u32.totalorder %s501_s20, %s834_s3 }
  0x1a   :  { %p507_p10 = pnand %p505_p9, %p502_p8 }
  0x1c   :  { %510 = shalt.err (!%p507_p10)
}
  0x1d   :  { %s511_s1 = scalar_lea.vmem %s55_s15, 512  ;;  %p516_p12 = scmp.lt.s32.totalorder %s55_s15, %s55_s15 }
  0x1e   :  { %p512_p11 = scmp.ne.s32.totalorder %s55_s15, %s511_s1  ;;  %p517_p13 = scmp.lt.s32.totalorder %s511_s1, %s511_s1 }
  0x20   :  { %p518_p0 = por %p517_p13, %p516_p12 }
  0x22   :  { %p519_p1 = pnand %p518_p0, %p512_p11 }
  0x24   :  { %522 = shalt.err (!%p519_p1)
}
  0x25   :  { %s668_s25 = smov 128   ;;  %s669_s26 = smov 8  }
  0x26   :  { %60 = dma.hbm_to_vmem [thread:$0]  %s834_s3, 512, %s55_s15, [#allocation9], %s668_s25, %s668_s25, %s669_s26  }
  0x27   :  { %s523_s8 = scalar_lea.hbm %s836_s5, 1024 }
  0x28   :  { %p524_p2 = scmp.ne.s32.totalorder %s836_s5, %s523_s8  ;;  %p527_p3 = scmp.lt.u32.totalorder %s523_s8, %s836_s5 }
  0x2a   :  { %p529_p4 = pnand %p527_p3, %p524_p2 }
  0x2c   :  { %532 = shalt.err (!%p529_p4)
}
  0x2d   :  { %s533_s13 = scalar_lea.vmem %s77_s17, 1024  ;;  %p538_p6 = scmp.lt.s32.totalorder %s77_s17, %s77_s17 }
  0x2e   :  { %p534_p5 = scmp.ne.s32.totalorder %s77_s17, %s533_s13  ;;  %p539_p7 = scmp.lt.s32.totalorder %s533_s13, %s533_s13 }
  0x30   :  { %p540_p8 = por %p539_p7, %p538_p6 }
  0x32   :  { %p541_p9 = pnand %p540_p8, %p534_p5 }
  0x34   :  { %544 = shalt.err (!%p541_p9)
}
  0x35   :  { %82 = dma.hbm_to_vmem [thread:$0]  %s836_s5, 1024, %s77_s17, [#allocation12], %s668_s25, %s668_s25, %s669_s26  }
  0x36   :  { %s670_s15 = smov [#allocation2]   ;;  %s671_s18 = smov [#allocation7]  }
  0x37   :  { %s22_s16 = sshll.u32 %s670_s15, 4  ;;  %s45_s19 = sshll.u32 %s671_s18, 4  ;;  %s23_s16 = int_to_ptr.vmem [resolvable:$true] %s22_s16  ;;  %s46_s19 = int_to_ptr.vmem [resolvable:$true] %s45_s19 }
  0x38   :  { %s545_s22 = scalar_lea.hbm %s831_s0, 256 }
  0x39   :  { %p546_p10 = scmp.ne.s32.totalorder %s831_s0, %s545_s22  ;;  %p549_p11 = scmp.lt.u32.totalorder %s545_s22, %s831_s0 }
  0x3b   :  { %p551_p12 = pnand %p549_p11, %p546_p10 }
  0x3d   :  { %554 = shalt.err (!%p551_p12)
}
  0x3e   :  { %s555_s5 = scalar_lea.vmem %s23_s16, 256  ;;  %p560_p0 = scmp.lt.s32.totalorder %s23_s16, %s23_s16 }
  0x3f   :  { %p556_p13 = scmp.ne.s32.totalorder %s23_s16, %s555_s5  ;;  %p561_p1 = scmp.lt.s32.totalorder %s555_s5, %s555_s5 }
  0x41   :  { %p562_p2 = por %p561_p1, %p560_p0 }
  0x43   :  { %p563_p3 = pnand %p562_p2, %p556_p13 }
  0x45   :  { %566 = shalt.err (!%p563_p3)
}
  0x46   :  { %28 = dma.hbm_to_vmem [thread:$0]  %s831_s0, 256, %s23_s16, [#allocation3], %s668_s25, %s668_s25, %s669_s26  }
  0x47   :  { %s567_s8 = scalar_lea.hbm %s833_s2, 16 }
  0x48   :  { %p568_p4 = scmp.ne.s32.totalorder %s833_s2, %s567_s8  ;;  %p571_p5 = scmp.lt.u32.totalorder %s567_s8, %s833_s2 }
  0x4a   :  { %p573_p6 = pnand %p571_p5, %p568_p4 }
  0x4c   :  { %576 = shalt.err (!%p573_p6)
}
  0x4d   :  { %s577_s13 = scalar_lea.vmem %s46_s19, 16  ;;  %s581_s3 = scalar_lea.vmem %s46_s19, 32 }
  0x4e   :  { %p578_p7 = scmp.ne.s32.totalorder %s46_s19, %s577_s13  ;;  %p582_p8 = scmp.lt.s32.totalorder %s46_s19, %s46_s19 }
  0x4f   :  { %p583_p9 = scmp.lt.s32.totalorder %s581_s3, %s577_s13 }
  0x51   :  { %p584_p10 = por %p583_p9, %p582_p8 }
  0x53   :  { %p585_p11 = pnand %p584_p10, %p578_p7 }
  0x55   :  { %588 = shalt.err (!%p585_p11)
}
  0x56   :  { %48 = dma.hbm_to_vmem [thread:$0]  %s833_s2, 16, %s46_s19, [#allocation6]  }
  0x57   :  { %s672_s15 = smov [#allocation10]   ;;  %s673_s18 = smov [#allocation13]  }
  0x58   :  { %s67_s16 = sshll.u32 %s672_s15, 4  ;;  %s89_s20 = sshll.u32 %s673_s18, 4  ;;  %s68_s16 = int_to_ptr.vmem [resolvable:$true] %s67_s16  ;;  %s90_s20 = int_to_ptr.vmem [resolvable:$true] %s89_s20 }
  0x59   :  { %s589_s23 = scalar_lea.hbm %s835_s4, 16 }
  0x5a   :  { %p590_p12 = scmp.ne.s32.totalorder %s835_s4, %s589_s23  ;;  %p593_p13 = scmp.lt.u32.totalorder %s589_s23, %s835_s4 }
  0x5c   :  { %p595_p0 = pnand %p593_p13, %p590_p12 }
  0x5e   :  { %598 = shalt.err (!%p595_p0)
}
  0x5f   :  { %s599_s2 = scalar_lea.vmem %s68_s16, 16  ;;  %s603_s19 = scalar_lea.vmem %s68_s16, 32 }
  0x60   :  { %p600_p1 = scmp.ne.s32.totalorder %s68_s16, %s599_s2  ;;  %p604_p2 = scmp.lt.s32.totalorder %s68_s16, %s68_s16 }
  0x61   :  { %p605_p3 = scmp.lt.s32.totalorder %s603_s19, %s599_s2 }
  0x63   :  { %p606_p4 = por %p605_p3, %p604_p2 }
  0x65   :  { %p607_p5 = pnand %p606_p4, %p600_p1 }
  0x67   :  { %610 = shalt.err (!%p607_p5)
}
  0x68   :  { %70 = dma.hbm_to_vmem [thread:$0]  %s835_s4, 16, %s68_s16, [#allocation9]  }
  0x69   :  { %s611_s8 = scalar_lea.hbm %s837_s6, 16 }
  0x6a   :  { %p612_p6 = scmp.ne.s32.totalorder %s837_s6, %s611_s8  ;;  %p615_p7 = scmp.lt.u32.totalorder %s611_s8, %s837_s6 }
  0x6c   :  { %p617_p8 = pnand %p615_p7, %p612_p6 }
  0x6e   :  { %620 = shalt.err (!%p617_p8)
}
  0x6f   :  { %s621_s13 = scalar_lea.vmem %s90_s20, 16  ;;  %s625_s3 = scalar_lea.vmem %s90_s20, 32 }
  0x70   :  { %p622_p9 = scmp.ne.s32.totalorder %s90_s20, %s621_s13  ;;  %p626_p10 = scmp.lt.s32.totalorder %s90_s20, %s90_s20 }
  0x71   :  { %p627_p11 = scmp.lt.s32.totalorder %s625_s3, %s621_s13 }
  0x73   :  { %p628_p12 = por %p627_p11, %p626_p10 }
  0x75   :  { %p629_p13 = pnand %p628_p12, %p622_p9 }
  0x77   :  { %632 = shalt.err (!%p629_p13)
}
  0x78   :  { %92 = dma.hbm_to_vmem [thread:$0]  %s837_s6, 16, %s90_s20, [#allocation12]  }
  0x79   :  { %655 = dma.done.wait [#allocation3], 256  }
  0x7a   :  { %656 = vsyncadd [#allocation3], 4294967040 }
  0x7b   :  { %657 = dma.done.wait [#allocation6], 32  }
  0x7c   :  { %658 = vsyncadd [#allocation6], 4294967264 }
  0x7d   :  { %659 = dma.done.wait [#allocation9], 528  }
  0x7e   :  { %660 = vsyncadd [#allocation9], 4294966768 }
  0x7f   :  { %661 = dma.done.wait [#allocation12], 1040  }
  0x80   :  { %662 = vsyncadd [#allocation12], 4294966256  ;;  %vm118_vm0 = vcmask 261120   ;;  %v114_v0 = vld [vmem:[#allocation2] sm:$0xff]  ;;  %v115_v1 = vld [vmem:[#allocation2 + $0x8] sm:$0xff]  ;;  %vm279_vm1 = vcmask 523264  }
  0x81   :  { %v119_v2 = vsel %vm118_vm0, %v114_v0, 0.0  ;;  %v122_v3 = vsel %vm118_vm0, %v115_v1, 0.0  ;;  %v162_v14 = vld [vmem:[#allocation8] sm:$0xff]  ;;  %v163_v15 = vld [vmem:[#allocation8 + $0x8] sm:$0xff]  ;;  %v164_v16 = vld [vmem:[#allocation8 + $0x10] sm:$0xff]  ;;  %s674_s6 = smov [#allocation14]  }
  0x82   :  { %120 = vadd.xlane.f32.xlu0 %v119_v2  ;;  %v437_v17 = vpack.c.bf16 %v163_v15, %v162_v14  ;;  %v165_v18 = vld [vmem:[#allocation8 + $0x18] sm:$0xff]  ;;  %v264_v36 = vld [vmem:[#allocation11] sm:$0xff]  ;;  %v265_v37 = vld [vmem:[#allocation11 + $0x8] sm:$0xff]  ;;  %s368_s14 = sshll.u32 %s674_s6, 4  ;;  %s369_s14 = int_to_ptr.vmem [resolvable:$true] %s368_s14 }
  0x83   :  { %v441_v19 = vpack.c.bf16 %v165_v18, %v164_v16  ;;  %v383_v27 = vld [vmem:[#allocation5] ss:$0 sm:$0xff]  ;;  %v384_v29 = vld [vmem:[#allocation7] ss:$0 sm:$0xff]  ;;  %v445_v38 = vpack.c.bf16 %v265_v37, %v264_v36  ;;  %v266_v39 = vld [vmem:[#allocation11 + $0x10] sm:$0xff]  ;;  %s633_s15 = scalar_lea.vmem %s369_s14, 256  ;;  %p638_p1 = scmp.lt.s32.totalorder %s369_s14, %s369_s14 }
  0x84   :  { %438 = vmatprep.subr.bf16.mxu0 %v437_v17  ;;  %v267_v40 = vld [vmem:[#allocation11 + $0x18] sm:$0xff]  ;;  %v268_v42 = vld [vmem:[#allocation11 + $0x20] sm:$0xff]  ;;  %v269_v43 = vld [vmem:[#allocation11 + $0x28] sm:$0xff]  ;;  %p634_p0 = scmp.ne.s32.totalorder %s369_s14, %s633_s15  ;;  %p639_p2 = scmp.lt.s32.totalorder %s633_s15, %s633_s15 }
  0x85   :  { %440 = vmatpush3.bf16.msra.mxu0 %v437_v17  ;;  %446 = vmatprep.subr.bf16.mxu1 %v445_v38  ;;  %v449_v41 = vpack.c.bf16 %v267_v40, %v266_v39  ;;  %v453_v44 = vpack.c.bf16 %v269_v43, %v268_v42  ;;  %v270_v45 = vld [vmem:[#allocation11 + $0x30] sm:$0xff]  ;;  %v271_v46 = vld [vmem:[#allocation11 + $0x38] sm:$0xff]  ;;  %v388_v63 = vld [vmem:[#allocation13] ss:$0 sm:$0xff] }
  0x86   :  { %123 = vadd.xlane.f32.xlu0 %v122_v3  ;;  %442 = vmatprep.subr.bf16.mxu0 %v441_v19  ;;  %v457_v47 = vpack.c.bf16 %v271_v46, %v270_v45  ;;  %v385_v48 = vld [vmem:[#allocation10] ss:$0 sm:$0xff]  ;;  %p640_p3 = por %p639_p2, %p638_p1 }
  0x87   :  { %448 = vmatpush3.bf16.msra.mxu1 %v445_v38 }
  0x88   :  { %450 = vmatprep.subr.bf16.mxu1 %v449_v41  ;;  %p641_p4 = pnand %p640_p3, %p634_p0 }
  0x89   :  { %444 = vmatpush3.bf16.msra.mxu0 %v441_v19 }
  0x8b   :  { %452 = vmatpush3.bf16.msra.mxu1 %v449_v41 }
  0x8c   :  { %454 = vmatprep.subr.bf16.mxu1 %v453_v44 }
  0x8f   :  { %456 = vmatpush3.bf16.msra.mxu1 %v453_v44 }
  0x90   :  { %458 = vmatprep.subr.bf16.mxu1 %v457_v47 }
  0x93   :  { %460 = vmatpush3.bf16.msra.mxu1 %v457_v47 }
 0x10f   :  { %v121_v4 = vpop.xlane.xlu0 %120 }
 0x110   :  { %v126_v5 = vmul.f32 0.03125, %v121_v4 }
 0x112   :  { %v128_v6 = vsub.f32 %v114_v0, %v126_v5 }
 0x113   :  { %v124_v7 = vpop.xlane.xlu0 %123 }
 0x114   :  { %v127_v8 = vmul.f32 0.03125, %v124_v7  ;;  %v130_v9 = vmul.f32 %v128_v6, %v128_v6 }
 0x116   :  { %v129_v10 = vsub.f32 %v115_v1, %v127_v8  ;;  %v132_v11 = vsel %vm118_vm0, %v130_v9, 0.0 }
 0x117   :  { %133 = vadd.xlane.f32.xlu1 %v132_v11 }
 0x118   :  { %v131_v12 = vmul.f32 %v129_v10, %v129_v10 }
 0x11a   :  { %v135_v13 = vsel %vm118_vm0, %v131_v12, 0.0 }
 0x11b   :  { %136 = vadd.xlane.f32.xlu1 %v135_v13 }
 0x1a4   :  { %v134_v20 = vpop.xlane.xlu1 %133 }
 0x1a5   :  { %v138_v21 = vmul.f32 0.03125, %v134_v20 }
 0x1a7   :  { %v140_v22 = vadd.f32 1e-05, %v138_v21 }
 0x1a8   :  { %v137_v23 = vpop.xlane.xlu1 %136 }
 0x1a9   :  { %471 = vrsqrt.f32 %v140_v22  ;;  %v139_v24 = vmul.f32 0.03125, %v137_v23 }
 0x1ab   :  { %v141_v25 = vadd.f32 1e-05, %v139_v24 }
 0x1ad   :  { %473 = vrsqrt.f32 %v141_v25 }
 0x1b3   :  { %v472_v26 = vpop.eup %471 }
 0x1b4   :  { %v144_v28 = vmul.f32 %v472_v26, %v128_v6 }
 0x1b6   :  { %v152_v30 = vmul.f32 %v383_v27, %v144_v28 }
 0x1b7   :  { %v474_v31 = vpop.eup %473 }
 0x1b8   :  { %v145_v32 = vmul.f32 %v474_v31, %v129_v10  ;;  %v160_v33 = vadd.f32 %v384_v29, %v152_v30 }
 0x1ba   :  { %v153_v34 = vmul.f32 %v383_v27, %v145_v32  ;;  %415 = vmatprep.mubr.msk.f32.mxu0 %vm118_vm0, %v160_v33 }
 0x1bc   :  { %v161_v35 = vadd.f32 %v384_v29, %v153_v34 }
 0x1be   :  { %416 = vmatmul.mubr.msk.f32.vlgmr.msra.gmra.mrb[0].mxu0 %vm118_vm0, %v161_v35 }
 0x291   :  { %v417_v49 = vpop.f32.mrb[0].mxu0 }
 0x292   :  { %v251_v50 = vadd.f32 %v417_v49, %v385_v48  ;;  %v245_v51 = vpop.f32.mrb[1].mxu0 }
 0x293   :  { %v246_v52 = vadd.f32 %v385_v48, %v245_v51 }
 0x294   :  { %v257_v53 = vmul.f32 0.70710677, %v251_v50  ;;  %v255_v60 = vmul.f32 0.5, %v251_v50 }
 0x295   :  { %v256_v54 = vmul.f32 0.70710677, %v246_v52  ;;  %v254_v58 = vmul.f32 0.5, %v246_v52 }
 0x296   :  { %475 = verf.f32 %v257_v53 }
 0x297   :  { %477 = verf.f32 %v256_v54 }
 0x2a0   :  { %v476_v55 = vpop.eup %475 }
 0x2a1   :  { %v478_v56 = vpop.eup %477  ;;  %v261_v57 = vadd.f32 1.0, %v476_v55 }
 0x2a2   :  { %v260_v59 = vadd.f32 1.0, %v478_v56 }
 0x2a3   :  { %v263_v62 = vmul.f32 %v261_v57, %v255_v60 }
 0x2a4   :  { %v262_v61 = vmul.f32 %v260_v59, %v254_v58 }
 0x2a6   :  { %434 = vmatprep.mubr.msk.f32.mxu1 %vm279_vm1, %v262_v61 }
 0x2a7   :  { %435 = vmatmul.mubr.msk.f32.vlgmr.msra.gmra.mrb[0].mxu1 %vm279_vm1, %v263_v62 }
 0x37a   :  { %v436_v0 = vpop.f32.mrb[0].mxu1 }
 0x37b   :  { %v358_v1 = vadd.f32 %v436_v0, %v388_v63  ;;  %v352_v2 = vpop.f32.mrb[1].mxu1 }
 0x37c   :  { %v353_v3 = vadd.f32 %v388_v63, %v352_v2 }
 0x37d   :  { %362 = vst.msk [vmem:[#allocation14 + $0x8] sm:$0xff] %vm118_vm0, %v358_v1 }
 0x37e   :  { %361 = vst.msk [vmem:[#allocation14] sm:$0xff] %vm118_vm0, %v353_v3 }
 0x37f   :  { %644 = shalt.err (!%p641_p4)
}
 0x380   :  { %s645_s20 = scalar_lea.hbm %s838_s7, 256 }
 0x381   :  { %p646_p5 = scmp.ne.s32.totalorder %s838_s7, %s645_s20  ;;  %p649_p6 = scmp.lt.u32.totalorder %s645_s20, %s838_s7 }
 0x383   :  { %p651_p7 = pnand %p649_p6, %p646_p5 }
 0x385   :  { %654 = shalt.err (!%p651_p7)
}
 0x386   :  { %374 = dma.vmem_to_hbm [thread:$0]  %s369_s14, 256, %s838_s7, [#allocation4], %s668_s25, %s668_s25, %s669_s26  }
 0x387   :  { %663 = dma.done.wait [#allocation4], 256  }
 0x388   :  { %664 = vsyncadd [#allocation4], 4294967040 }
 0x389   :  { %378 = vsyncpa [#allocation3], 1 }
 0x38a   :  { %379 = vsyncpa [#allocation6], 1 }
 0x38b   :  { %380 = vsyncpa [#allocation9], 1 }
 0x38c   :  { %381 = vsyncpa [#allocation12], 1 }
 0x38d   :  { %382 = vsyncpa [#allocation4], 1 }

</bundles_post_ra>
